<compile_context>
chip_gen: v5e
topology: v5e:2x2
jax: 0.10.0
libtpu: 0.0.40
codegen_flags: <defaults>
</compile_context>

<pallas_src>
import functools

import jax
import jax.numpy as jnp
from jax import lax
from jax.experimental import pallas as pl
from jax.experimental.pallas import tpu as pltpu


def _round_up(v, m):
    return ((v + m - 1) // m) * m


# --------------------------------------------------------------------------- kernel


def _text_encoder_kernel(x_ref, m_ref, w1_ref, b1_ref, w2_ref, b2_ref,
                         out_ref, acc_ref, den_ref, *, seq_len, s_tile,
                         apply_s_mask):
    # x_ref:   (tile_bn, s_tile, D)   streamed activations (native dtype)
    # m_ref:   (1, tile_bn, s_tile)   mask chunk (token axis lane-dense)
    # w1_ref:  (D, Hp)  b1_ref: (1, Hp)  w2_ref: (Hp, Hp)  b2_ref: (1, Hp)
    # out_ref: (tile_bn, Hp)
    # acc_ref: (tile_bn, D)  f32 scratch  -- running masked sum over tokens
    # den_ref: (tile_bn, 1)  f32 scratch  -- running mask count
    j = pl.program_id(1)

    @pl.when(j == 0)
    def _init():
        acc_ref[...] = jnp.zeros_like(acc_ref)
        den_ref[...] = jnp.zeros_like(den_ref)

    xs = x_ref[...].astype(jnp.float32)            # (tile_bn, s_tile, D)
    ms = m_ref[0].astype(jnp.float32)              # (tile_bn, s_tile)

    if apply_s_mask:
        # Last token chunk may read past S (boundary block): zero those x values so
        # garbage (possibly NaN) never reaches the accumulator.  The mask itself is
        # zero-padded on the host, so the denominator is already correct.
        s_idx = j * s_tile + lax.broadcasted_iota(jnp.int32, (1, s_tile, 1), 1)
        xs = jnp.where(s_idx < seq_len, xs, 0.0)

    acc_ref[...] += jnp.sum(xs * ms[:, :, None], axis=1)
    den_ref[...] += jnp.sum(ms, axis=1, keepdims=True)

    @pl.when(j == pl.num_programs(1) - 1)
    def _finalize():
        inv = pl.reciprocal(jnp.maximum(den_ref[...], 1e-6), approx=False)
        pooled = acc_ref[...] * inv                                   # masked mean
        h = jnp.dot(pooled, w1_ref[...],
                    preferred_element_type=jnp.float32) + b1_ref[...]
        h = jnp.maximum(h, 0.0)
        o = jnp.dot(h, w2_ref[...],
                    preferred_element_type=jnp.float32) + b2_ref[...]
        out_ref[...] = o.astype(out_ref.dtype)


# --------------------------------------------------------------------------- tiling


def _vmem_estimate(tile_bn, s_tile, D, Hp, x_bytes, out_bytes):
    """Conservative VMEM bytes, including lane (128) / sublane (8) padding."""
    r8 = lambda v: _round_up(v, 8)
    r128 = lambda v: _round_up(v, 128)
    st, Dp = r8(s_tile), r128(D)
    fixed = 2 * (r8(D) * Hp + Hp * Hp + 2 * 8 * Hp) * 4              # head params (worst-case double buffered)
    x_blk = 2 * tile_bn * st * Dp * x_bytes                          # x stream (double buffered)
    m_blk = 2 * r8(tile_bn) * r128(s_tile) * 4                       # mask stream
    o_blk = 2 * r8(tile_bn) * Hp * out_bytes                         # output tile
    scratch = tile_bn * Dp * 4 + tile_bn * 128 * 4                   # acc + den accumulators
    temps = 3 * tile_bn * st * Dp * 4 + 3 * r8(tile_bn) * Hp * 4     # f32 temporaries
    return fixed + x_blk + m_blk + o_blk + scratch + temps


def _pick_tiles(BN, S, D, Hp, x_bytes, out_bytes, budget):
    max_tile_bn = _round_up(BN, 8)
    if BN >= 128:
        # keep >= 2 steps on the (parallel) BN axis so v7x's two TensorCores both get work
        max_tile_bn = min(max_tile_bn, _round_up(-(-BN // 2), 8))
    bn_cands = [t for t in (512, 256, 128, 64, 32, 16, 8) if t <= max_tile_bn]
    if max_tile_bn not in bn_cands:
        bn_cands.insert(0, max_tile_bn)
    s_cands = [S] + [t for t in (128, 64, 32, 16, 8) if t < S]
    for tbn in bn_cands:                   # prefer large BN tile (MXU M, lane-dense out)
        for st in s_cands:                 # then the largest token chunk that fits
            if _vmem_estimate(tbn, st, D, Hp, x_bytes, out_bytes) <= budget:
                return tbn, st
    return bn_cands[-1], (8 if S >= 8 else S)


def _default_vmem_limit():
    cap = None
    try:
        cap = pltpu.get_tpu_info().vmem_capacity_bytes
    except Exception:
        cap = None
    if not cap:
        cap = 64 * 1024 * 1024             # conservative: v7x has 64 MiB per TensorCore
    return int(cap * 0.65)                 # one consistent number for picker + compiler


# --------------------------------------------------------------------------- wrapper


def text_encoder_forward(x, m, w1, b1, w2, b2, *, tile_bn=None, s_tile=None,
                         vmem_limit_bytes=None):
    """x: (B, N, S, D), m: (B, N, S, 1).  Returns (out: (B, N, H), mask: (B, N, 1))."""
    B, N, S, D = x.shape
    H = w1.shape[1]
    BN = B * N
    Hp = _round_up(H, 128)                 # lane-dense head width

    if vmem_limit_bytes is None:
        vmem_limit_bytes = _default_vmem_limit()
    budget = max(vmem_limit_bytes - (2 << 20), 4 << 20)   # headroom for Mosaic scratch

    x_bytes = jnp.dtype(x.dtype).itemsize
    auto_tbn, auto_st = _pick_tiles(BN, S, D, Hp, x_bytes, x_bytes, budget)
    if tile_bn is None:
        tile_bn = auto_tbn
    if s_tile is None:
        s_tile = auto_st
    tile_bn = max(8, (min(tile_bn, _round_up(BN, 8)) // 8) * 8)
    s_tile = S if s_tile >= S else max(8, (s_tile // 8) * 8)

    bn_grid = -(-BN // tile_bn)
    s_grid = -(-S // s_tile)
    Sp = s_grid * s_tile

    # head parameters padded to Hp (zero rows/cols are inert through ReLU)
    f32 = jnp.float32
    w1p = jnp.zeros((D, Hp), f32).at[:, :H].set(w1.astype(f32))
    b1p = jnp.zeros((1, Hp), f32).at[0, :H].set(b1.astype(f32))
    w2p = jnp.zeros((Hp, Hp), f32).at[:H, :H].set(w2.astype(f32))
    b2p = jnp.zeros((1, Hp), f32).at[0, :H].set(b2.astype(f32))

    # x is streamed untouched: no host-side pad/copy of the big activation tensor.
    x3 = x.reshape(BN, S, D)

    # mask is tiny vs x: zero-pad its token axis to Sp and lay it out
    # (s_grid, BN, s_tile) so every (i, j) grid step gets a lane-dense, in-bounds chunk.
    m2 = m.reshape(BN, S).astype(jnp.float32)
    if Sp != S:
        m2 = jnp.pad(m2, ((0, 0), (0, Sp - S)))
    m3 = m2.reshape(BN, s_grid, s_tile).transpose(1, 0, 2)

    kernel = functools.partial(_text_encoder_kernel, seq_len=S, s_tile=s_tile,
                               apply_s_mask=(S % s_tile != 0))

    out = pl.pallas_call(
        kernel,
        out_shape=jax.ShapeDtypeStruct((BN, Hp), x.dtype),
        grid_spec=pltpu.PrefetchScalarGridSpec(
            num_scalar_prefetch=0,
            grid=(bn_grid, s_grid),
            in_specs=[
                pl.BlockSpec((tile_bn, s_tile, D), lambda i, j: (i, j, 0)),   # x stream
                pl.BlockSpec((1, tile_bn, s_tile), lambda i, j: (j, i, 0)),   # mask chunk
                pl.BlockSpec((D, Hp),  lambda i, j: (0, 0)),                  # w1 (resident)
                pl.BlockSpec((1, Hp),  lambda i, j: (0, 0)),                  # b1
                pl.BlockSpec((Hp, Hp), lambda i, j: (0, 0)),                  # w2
                pl.BlockSpec((1, Hp),  lambda i, j: (0, 0)),                  # b2
            ],
            out_specs=pl.BlockSpec((tile_bn, Hp), lambda i, j: (i, 0)),
            scratch_shapes=[
                pltpu.VMEM((tile_bn, D), jnp.float32),   # pooled-sum accumulator
                pltpu.VMEM((tile_bn, 1), jnp.float32),   # mask-count accumulator
            ],
        ),
        compiler_params=pltpu.CompilerParams(
            dimension_semantics=("parallel", "arbitrary"),
            vmem_limit_bytes=int(vmem_limit_bytes),
        ),
    )(x3, m3, w1p, b1p, w2p, b2p)

    out = out[:, :H].reshape(B, N, H)
    mcol = jnp.max(m, axis=2)                            # collaps_mask(m, dim=2)
    return out, mcol


# --------------------------------------------------------------------------- test


def _reference(x, m, w1, b1, w2, b2):
    B, N, S, D = x.shape
    H = w1.shape[1]
    x2 = x.reshape(B * N, S, D).astype(jnp.float32)
    m2 = m.reshape(B * N, S, 1).astype(jnp.float32)
    pooled = jnp.sum(x2 * m2, axis=1) / jnp.maximum(jnp.sum(m2, axis=1), 1e-6)
    h = jnp.maximum(pooled @ w1 + b1, 0.0)
    o = h @ w2 + b2
    mcol = jnp.max(m2, axis=1)
    return o.reshape(B, N, H), mcol.reshape(B, N, 1)


def _run_case(key, B, N, S, D, H, dtype=jnp.float32, tile_bn=None, s_tile=None,
              atol=1e-5, rtol=1e-5):
    kx, km, kw1, kb1, kw2, kb2 = jax.random.split(key, 6)
    x = jax.random.normal(kx, (B, N, S, D), dtype=jnp.float32).astype(dtype)
    mm = (jax.random.uniform(km, (B, N, S, 1)) > 0.3).astype(jnp.float32)
    mm = mm.at[:, :, 0, :].set(1.0)          # every news item has at least one token

    w1 = jax.random.normal(kw1, (D, H), dtype=jnp.float32) / jnp.sqrt(D)
    b1 = jax.random.normal(kb1, (H,), dtype=jnp.float32) * 0.01
    w2 = jax.random.normal(kw2, (H, H), dtype=jnp.float32) / jnp.sqrt(H)
    b2 = jax.random.normal(kb2, (H,), dtype=jnp.float32) * 0.01

    out, mcol = text_encoder_forward(x, mm, w1, b1, w2, b2,
                                     tile_bn=tile_bn, s_tile=s_tile)
    out, mcol = jax.block_until_ready((out, mcol))

    ref_out, ref_mcol = _reference(x, mm, w1, b1, w2, b2)
    assert out.shape == (B, N, H) and mcol.shape == (B, N, 1)
    err = float(jnp.max(jnp.abs(out.astype(jnp.float32) - ref_out)))
    assert jnp.allclose(out.astype(jnp.float32), ref_out, atol=atol, rtol=rtol), err
    assert jnp.allclose(mcol, ref_mcol)


if __name__ == "__main__":
    key = jax.random.PRNGKey(0)
    k1, k2, k3 = jax.random.split(key, 3)

    # 1) auto-tiled path: BN=8, S=8 -> grid collapses to (1, 1)
    _run_case(k1, B=2, N=4, S=8, D=32, H=32)
    # 2) BN remainder (no host pad of x) + multi-step token accumulation with a
    #    partial last chunk: BN=10 / tile_bn=8, S=12 / s_tile=8, H=40 -> Hp=128
    _run_case(k2, B=2, N=5, S=12, D=32, H=40, tile_bn=8, s_tile=8)
    # 3) bf16-streamed activations (halved HBM traffic on v6e/v7x); f32 accumulation in-kernel
    _run_case(k3, B=2, N=4, S=16, D=64, H=32, dtype=jnp.bfloat16,
              tile_bn=8, s_tile=8, atol=2e-2, rtol=2e-2)

    print("KERNEL_OK")
</pallas_src>

<mosaic_0001>
module attributes {stable_mosaic.version = 11 : i64} {
  func.func @_text_encoder_kernel(%arg0: i32, %arg1: i32, %arg2: memref<8x8x32xf32, #tpu.memory_space<vmem>>, %arg3: memref<1x8x8xf32, #tpu.memory_space<vmem>>, %arg4: memref<32x128xf32, #tpu.memory_space<vmem>>, %arg5: memref<1x128xf32, #tpu.memory_space<vmem>>, %arg6: memref<128x128xf32, #tpu.memory_space<vmem>>, %arg7: memref<1x128xf32, #tpu.memory_space<vmem>>, %arg8: memref<8x128xf32, #tpu.memory_space<vmem>>, %arg9: memref<8x32xf32, #tpu.memory_space<vmem>>, %arg10: memref<8x1xf32, #tpu.memory_space<vmem>>) attributes {dimension_semantics = [#tpu.dimension_semantics<parallel>, #tpu.dimension_semantics<arbitrary>], iteration_bounds = array<i64: 1, 1>, scalar_prefetch = 0 : i64, scratch_operands = 2 : i64, tpu.core_type = #tpu.core_type<tc>, window_params = [{transform_indices = @transform_0, window_bounds = array<i64: 8, 8, 32>}, {transform_indices = @transform_1, window_bounds = array<i64: 1, 8, 8>}, {pipeline_mode = #tpu.pipeline_mode<synchronous>, transform_indices = @transform_2, window_bounds = array<i64: 32, 128>}, {pipeline_mode = #tpu.pipeline_mode<synchronous>, transform_indices = @transform_3, window_bounds = array<i64: 1, 128>}, {pipeline_mode = #tpu.pipeline_mode<synchronous>, transform_indices = @transform_4, window_bounds = array<i64: 128, 128>}, {pipeline_mode = #tpu.pipeline_mode<synchronous>, transform_indices = @transform_5, window_bounds = array<i64: 1, 128>}, {transform_indices = @transform_6, window_bounds = array<i64: 8, 128>}]} {
    %c0_i32 = arith.constant 0 : i32
    %0 = arith.cmpi eq, %arg1, %c0_i32 : i32
    %1 = arith.extui %0 : i1 to i32
    %c0_i32_0 = arith.constant 0 : i32
    %2 = arith.cmpi ne, %1, %c0_i32_0 : i32
    scf.if %2 {
      %cst_17 = arith.constant 0.000000e+00 : f32
      %21 = vector.broadcast %cst_17 : f32 to vector<8x32xf32>
      %c0_18 = arith.constant 0 : index
      %c0_19 = arith.constant 0 : index
      %22 = vector.load %arg9[%c0_18, %c0_19] : memref<8x32xf32, #tpu.memory_space<vmem>>, vector<8x32xf32>
      tpu.vector_store %arg9[%c0_18, %c0_19], %21 {strides = array<i32>} : memref<8x32xf32, #tpu.memory_space<vmem>>, vector<8x32xf32>,
      %cst_20 = arith.constant 0.000000e+00 : f32
      %23 = vector.broadcast %cst_20 : f32 to vector<8x1xf32>
      %c0_21 = arith.constant 0 : index
      %c0_22 = arith.constant 0 : index
      %24 = vector.load %arg10[%c0_21, %c0_22] : memref<8x1xf32, #tpu.memory_space<vmem>>, vector<8x1xf32>
      tpu.vector_store %arg10[%c0_21, %c0_22], %23 {strides = array<i32>} : memref<8x1xf32, #tpu.memory_space<vmem>>, vector<8x1xf32>,
    } else {
    }
    %c0 = arith.constant 0 : index
    %c0_1 = arith.constant 0 : index
    %c0_2 = arith.constant 0 : index
    %3 = vector.load %arg2[%c0, %c0_1, %c0_2] : memref<8x8x32xf32, #tpu.memory_space<vmem>>, vector<8x8x32xf32>
    %c0_3 = arith.constant 0 : index
    %c0_4 = arith.constant 0 : index
    %c0_5 = arith.constant 0 : index
    %4 = vector.load %arg3[%c0_3, %c0_4, %c0_5] : memref<1x8x8xf32, #tpu.memory_space<vmem>>, vector<1x8x8xf32>
    %5 = vector.shape_cast %4 : vector<1x8x8xf32> to vector<8x8xf32>
    %c0_6 = arith.constant 0 : index
    %c0_7 = arith.constant 0 : index
    %6 = vector.load %arg9[%c0_6, %c0_7] : memref<8x32xf32, #tpu.memory_space<vmem>>, vector<8x32xf32>
    %7 = vector.shape_cast %5 : vector<8x8xf32> to vector<8x8x1xf32>
    %8 = vector.broadcast %7 : vector<8x8x1xf32> to vector<8x8x32xf32>
    %9 = arith.mulf %3, %8 : vector<8x8x32xf32>
    %cst = arith.constant dense<0.000000e+00> : vector<8x32xf32>
    %10 = vector.multi_reduction <add>, %9, %cst [1] : vector<8x8x32xf32> to vector<8x32xf32>
    %11 = arith.addf %6, %10 : vector<8x32xf32>
    %c0_8 = arith.constant 0 : index
    %c0_9 = arith.constant 0 : index
    %12 = vector.load %arg9[%c0_8, %c0_9] : memref<8x32xf32, #tpu.memory_space<vmem>>, vector<8x32xf32>
    tpu.vector_store %arg9[%c0_8, %c0_9], %11 {strides = array<i32>} : memref<8x32xf32, #tpu.memory_space<vmem>>, vector<8x32xf32>,
    %c0_10 = arith.constant 0 : index
    %c0_11 = arith.constant 0 : index
    %13 = vector.load %arg10[%c0_10, %c0_11] : memref<8x1xf32, #tpu.memory_space<vmem>>, vector<8x1xf32>
    %cst_12 = arith.constant dense<0.000000e+00> : vector<8xf32>
    %14 = vector.multi_reduction <add>, %5, %cst_12 [1] : vector<8x8xf32> to vector<8xf32>
    %15 = vector.shape_cast %14 : vector<8xf32> to vector<8x1xf32>
    %16 = arith.addf %13, %15 : vector<8x1xf32>
    %c0_13 = arith.constant 0 : index
    %c0_14 = arith.constant 0 : index
    %17 = vector.load %arg10[%c0_13, %c0_14] : memref<8x1xf32, #tpu.memory_space<vmem>>, vector<8x1xf32>
    tpu.vector_store %arg10[%c0_13, %c0_14], %16 {strides = array<i32>} : memref<8x1xf32, #tpu.memory_space<vmem>>, vector<8x1xf32>,
    %c0_i32_15 = arith.constant 0 : i32
    %18 = arith.cmpi eq, %arg1, %c0_i32_15 : i32
    %19 = arith.extui %18 : i1 to i32
    %c0_i32_16 = arith.constant 0 : i32
    %20 = arith.cmpi ne, %19, %c0_i32_16 : i32
    scf.if %20 {
      %c0_17 = arith.constant 0 : index
      %c0_18 = arith.constant 0 : index
      %21 = vector.load %arg10[%c0_17, %c0_18] : memref<8x1xf32, #tpu.memory_space<vmem>>, vector<8x1xf32>
      %cst_19 = arith.constant 9.99999997E-7 : f32
      %22 = vector.broadcast %cst_19 : f32 to vector<8x1xf32>
      %23 = arith.maximumf %21, %22 : vector<8x1xf32>
      %24 = tpu.reciprocal %23 : vector<8x1xf32> -> vector<8x1xf32>
      %c0_20 = arith.constant 0 : index
      %c0_21 = arith.constant 0 : index
      %25 = vector.load %arg9[%c0_20, %c0_21] : memref<8x32xf32, #tpu.memory_space<vmem>>, vector<8x32xf32>
      %26 = vector.broadcast %24 : vector<8x1xf32> to vector<8x32xf32>
      %27 = arith.mulf %25, %26 : vector<8x32xf32>
      %c0_22 = arith.constant 0 : index
      %c0_23 = arith.constant 0 : index
      %28 = vector.load %arg4[%c0_22, %c0_23] : memref<32x128xf32, #tpu.memory_space<vmem>>, vector<32x128xf32>
      %cst_24 = arith.constant dense<0.000000e+00> : vector<8x128xf32>
      %29 = tpu.matmul %27, %28, %cst_24 {dimension_numbers = #tpu.dot_dimension_numbers<[1], [0], [0], [1], [0, 0, 1, 1], [], []>} : vector<8x32xf32>, vector<32x128xf32>, vector<8x128xf32> -> vector<8x128xf32>
      %c0_25 = arith.constant 0 : index
      %c0_26 = arith.constant 0 : index
      %30 = vector.load %arg5[%c0_25, %c0_26] : memref<1x128xf32, #tpu.memory_space<vmem>>, vector<1x128xf32>
      %31 = vector.broadcast %30 : vector<1x128xf32> to vector<8x128xf32>
      %32 = arith.addf %29, %31 : vector<8x128xf32>
      %cst_27 = arith.constant 0.000000e+00 : f32
      %33 = vector.broadcast %cst_27 : f32 to vector<8x128xf32>
      %34 = arith.maximumf %32, %33 : vector<8x128xf32>
      %c0_28 = arith.constant 0 : index
      %c0_29 = arith.constant 0 : index
      %35 = vector.load %arg6[%c0_28, %c0_29] : memref<128x128xf32, #tpu.memory_space<vmem>>, vector<128x128xf32>
      %cst_30 = arith.constant dense<0.000000e+00> : vector<8x128xf32>
      %36 = tpu.matmul %34, %35, %cst_30 {dimension_numbers = #tpu.dot_dimension_numbers<[1], [0], [0], [1], [0, 0, 1, 1], [], []>} : vector<8x128xf32>, vector<128x128xf32>, vector<8x128xf32> -> vector<8x128xf32>
      %c0_31 = arith.constant 0 : index
      %c0_32 = arith.constant 0 : index
      %37 = vector.load %arg7[%c0_31, %c0_32] : memref<1x128xf32, #tpu.memory_space<vmem>>, vector<1x128xf32>
      %38 = vector.broadcast %37 : vector<1x128xf32> to vector<8x128xf32>
      %39 = arith.addf %36, %38 : vector<8x128xf32>
      %c0_33 = arith.constant 0 : index
      %c0_34 = arith.constant 0 : index
      %40 = vector.load %arg8[%c0_33, %c0_34] : memref<8x128xf32, #tpu.memory_space<vmem>>, vector<8x128xf32>
      tpu.vector_store %arg8[%c0_33, %c0_34], %39 {strides = array<i32>} : memref<8x128xf32, #tpu.memory_space<vmem>>, vector<8x128xf32>,
    } else {
    }
    return
  }
  func.func @transform_0(%arg0: i32, %arg1: i32) -> (i32, i32, i32) {
    %c0_i32 = arith.constant 0 : i32
    %c0_i32_0 = arith.constant 0 : i32
    return %arg0, %arg1, %c0_i32 : i32, i32, i32
  }
  func.func @transform_1(%arg0: i32, %arg1: i32) -> (i32, i32, i32) {
    %c0_i32 = arith.constant 0 : i32
    %c0_i32_0 = arith.constant 0 : i32
    return %arg1, %arg0, %c0_i32 : i32, i32, i32
  }
  func.func @transform_2(%arg0: i32, %arg1: i32) -> (i32, i32) {
    %c0_i32 = arith.constant 0 : i32
    %c0_i32_0 = arith.constant 0 : i32
    %c0_i32_1 = arith.constant 0 : i32
    return %c0_i32, %c0_i32_0 : i32, i32
  }
  func.func @transform_3(%arg0: i32, %arg1: i32) -> (i32, i32) {
    %c0_i32 = arith.constant 0 : i32
    %c0_i32_0 = arith.constant 0 : i32
    %c0_i32_1 = arith.constant 0 : i32
    return %c0_i32, %c0_i32_0 : i32, i32
  }
  func.func @transform_4(%arg0: i32, %arg1: i32) -> (i32, i32) {
    %c0_i32 = arith.constant 0 : i32
    %c0_i32_0 = arith.constant 0 : i32
    %c0_i32_1 = arith.constant 0 : i32
    return %c0_i32, %c0_i32_0 : i32, i32
  }
  func.func @transform_5(%arg0: i32, %arg1: i32) -> (i32, i32) {
    %c0_i32 = arith.constant 0 : i32
    %c0_i32_0 = arith.constant 0 : i32
    %c0_i32_1 = arith.constant 0 : i32
    return %c0_i32, %c0_i32_0 : i32, i32
  }
  func.func @transform_6(%arg0: i32, %arg1: i32) -> (i32, i32) {
    %c0_i32 = arith.constant 0 : i32
    %c0_i32_0 = arith.constant 0 : i32
    return %arg0, %c0_i32 : i32, i32
  }
}

</mosaic_0001>

<bundles_post_ra>
// kernel: tpu_custom_call.1
= control target key start
LH: loop header
LB: loop body
LE: loop exit
PB: predicated region body
PF: predicated region fallthrough
CT: control target
= control target key end

     0   :  { %11 = vsyncpa [#allocation5], 0  ;;  %s601_s0 = inlined_call_operand.hbm [shape: f32[8,8,32], index: 0, kind: input, shape index: {}]   ;;  %s602_s1 = inlined_call_operand.hbm [shape: f32[1,8,8], index: 1, kind: input, shape index: {}]   ;;  %s603_s2 = inlined_call_operand.hbm [shape: f32[32,128], index: 2, kind: input, shape index: {}]   ;;  %s604_s3 = inlined_call_operand.vmem [shape: f32[1,128], index: 3, kind: input, shape index: {}]   ;;  %s605_s4 = inlined_call_operand.hbm [shape: f32[128,128], index: 4, kind: input, shape index: {}]   ;;  %s606_s5 = inlined_call_operand.vmem [shape: f32[1,128], index: 5, kind: input, shape index: {}]   ;;  %s607_s6 = inlined_call_operand.hbm [shape: f32[8,128], index: 6, kind: output, shape index: {}]  }
   0x1   :  { %12 = vsyncpa [#allocation8], 0 }
   0x2   :  { %13 = vsyncpa [#allocation11], 0  ;;  %s33_s23 = sshll.u32 %s602_s1, 4  ;;  %s34_s23 = int_to_ptr.hbm [resolvable:$true] %s33_s23 }
   0x3   :  { %14 = vsyncpa [#allocation6], 0  ;;  %s522_s24 = smov [#allocation7]   ;;  %s19_s28 = sshll.u32 %s601_s0, 4  ;;  %s20_s28 = int_to_ptr.hbm [resolvable:$true] %s19_s28 }
   0x4   :  { %s35_s25 = sshll.u32 %s522_s24, 4  ;;  %s523_s29 = smov [#allocation4]   ;;  %s36_s25 = int_to_ptr.vmem [resolvable:$true] %s35_s25 }
   0x5   :  { %38 = dma.hbm_to_vmem [thread:$0]  %s34_s23, 128, %s36_s25, [#allocation8]  }
   0x6   :  { %s21_s30 = sshll.u32 %s523_s29, 4  ;;  %s524_s7 = smov 128   ;;  %s22_s30 = int_to_ptr.vmem [resolvable:$true] %s21_s30 }
   0x7   :  { %s525_s8 = smov 8   ;;  %s43_s1 = sshll.u32 %s603_s2, 4  ;;  %s44_s1 = int_to_ptr.hbm [resolvable:$true] %s43_s1 }
   0x8   :  { %27 = dma.hbm_to_vmem [thread:$0]  %s20_s28, 1024, %s22_s30, [#allocation5], %s524_s7, %s524_s7, %s525_s8  }
   0x9   :  { %s526_s11 = smov [#allocation9]   ;;  %s58_s0 = sshll.u32 %s605_s4, 4  ;;  %s59_s0 = int_to_ptr.hbm [resolvable:$true] %s58_s0 }
   0xa   :  { %s45_s12 = sshll.u32 %s526_s11, 4  ;;  %s527_s15 = smov [#allocation10]   ;;  %s46_s12 = int_to_ptr.vmem [resolvable:$true] %s45_s12 }
   0xb   :  { %51 = dma.hbm_to_vmem [thread:$0]  %s44_s1, 512, %s46_s12, [#allocation8], %s524_s7, %s524_s7, %s525_s8  }
   0xc   :  { %s60_s16 = sshll.u32 %s527_s15, 4  ;;  %s61_s16 = int_to_ptr.vmem [resolvable:$true] %s60_s16 }
   0xd   :  { %66 = dma.hbm_to_vmem [thread:$0]  %s59_s0, 2048, %s61_s16, [#allocation11], %s524_s7, %s524_s7, %s525_s8  }
   0xe   :  { %514 = dma.done.wait [#allocation5], 1024  }
   0xf   :  { %515 = vsyncadd [#allocation5], 4294966272 }
  0x10   :  { %516 = dma.done.wait [#allocation8], 640  }
  0x11   :  { %517 = vsyncadd [#allocation8], 4294966656 }
  0x12   :  { %518 = dma.done.wait [#allocation11], 2048  }
  0x13   :  { %519 = vsyncadd [#allocation11], 4294965248  ;;  %v104_v0 = vlaneseq  ;;  %vm89_vm0 = vcmask 261120   ;;  %vm91_vm1 = vcmask 7168   ;;  %vm250_vm2 = vcmask 64512   ;;  %v101_v3 = vld [vmem:[#allocation7] sm:$0xff] }
  0x14   :  { %v528_v2 = vmov 0.0   ;;  %v251_v4 = vsel %vm250_vm2, %v101_v3, 0.0  ;;  %v110_v5 = vperm.slane %v101_v3, 1  ;;  %v124_v6 = vperm.slane %v101_v3, 3  ;;  %v94_v17 = vld [vmem:[#allocation4 + $0x8] sm:$0xff]  ;;  %v96_v21 = vld [vmem:[#allocation4 + $0x18] sm:$0xff] }
  0x15   :  { %v105_v1 = vshrl.u32 %v104_v0, 7  ;;  %90 = vst.msk [vmem:[#allocation2] sm:$0xff] %vm89_vm0, %v528_v2  ;;  %252 = vadd.xlane.f32.xlu0 %v251_v4  ;;  %v117_v7 = vperm.slane %v101_v3, 2  ;;  %v131_v8 = vperm.slane %v101_v3, 4  ;;  %v138_v9 = vperm.slane %v101_v3, 5  ;;  %v97_v22 = vld [vmem:[#allocation4 + $0x20] sm:$0xff] }
  0x16   :  { %92 = vst.msk [vmem:[#allocation3] sm:$0xff] %vm91_vm1, %v528_v2  ;;  %v103_v10 = vperm.slane %v101_v3, 0  ;;  %v145_v11 = vperm.slane %v101_v3, 6  ;;  %v152_v12 = vperm.slane %v101_v3, 7  ;;  %v529_v13 = vmov 0   ;;  %v95_v27 = vld [vmem:[#allocation4 + $0x10] sm:$0xff] }
  0x17   :  { %386 = vset.pattern.permute.xlu1 %v105_v1  ;;  %385 = vset.pattern.permute.xlu0 %v105_v1  ;;  %v99_v35 = vld [vmem:[#allocation4 + $0x30] sm:$0xff]  ;;  %v286_v38 = vld [vmem:[#allocation9 + $0x18] sm:$0xff]  ;;  %v285_v39 = vld [vmem:[#allocation9 + $0x10] sm:$0xff]  ;;  %vm232_vm7 = vcmask 1041409   ;;  %vm234_vm8 = vcmask 1042434   ;;  %vm236_vm9 = vcmask 1043459  }
  0x18   :  { %387 = vset.pattern.permute.xlu2 %v105_v1  ;;  %306 = vmatpush.msra.mxu0 %v286_v38  ;;  %v284_v45 = vld [vmem:[#allocation9 + $0x8] sm:$0xff]  ;;  %v98_v46 = vld [vmem:[#allocation4 + $0x28] sm:$0xff]  ;;  %v93_v50 = vld [vmem:[#allocation4] sm:$0xff]  ;;  %vm238_vm10 = vcmask 1044484   ;;  %vm240_vm11 = vcmask 1045509   ;;  %vm242_vm12 = vcmask 1046534  }
  0x19   :  { %vm244_vm13 = vcmask 1047559   ;;  %s530_s19 = smov [#allocation12]   ;;  %s363_s23 = sshll.u32 %s607_s6, 4  ;;  %s364_s23 = int_to_ptr.hbm [resolvable:$true] %s363_s23 }
  0x1a   :  { %307 = vmatpush.msra.mxu0 %v285_v39  ;;  %s361_s20 = sshll.u32 %s530_s19, 4  ;;  %s362_s20 = int_to_ptr.vmem [resolvable:$true] %s361_s20 }
  0x1c   :  { %308 = vmatpush.msra.mxu0 %v284_v45 }
  0x1d   :  { %v249_v14 = vld [vmem:[#allocation3] sm:$0xff] }
  0x1f   :  { %115 = vperm.xlu1 %386, %v110_v5  }
  0x20   :  { %129 = vperm.xlu2 %387, %v124_v6  }
  0x27   :  { %122 = vperm.xlu1 %386, %v117_v7  }
  0x28   :  { %136 = vperm.xlu2 %387, %v131_v8  }
  0x29   :  { %108 = vperm.xlu0 %385, %v103_v10  }
  0x2f   :  { %143 = vperm.xlu1 %386, %v138_v9  }
  0x30   :  { %150 = vperm.xlu2 %387, %v145_v11  }
  0x31   :  { %389 = vset.pattern.permute.xlu0 %v529_v13 }
  0x37   :  { %157 = vperm.xlu1 %386, %v152_v12   ;;  %v100_v12 = vld [vmem:[#allocation4 + $0x38] sm:$0xff] }
  0x38   :  { %388 = vset.pattern.permute.xlu2 %v529_v13 }
  0x7a   :  { %v130_v15 = vpop.permute.xlu2 %129 }
  0x7b   :  { %v162_v24 = vmul.f32 %v130_v15, %v96_v21 }
  0x7d   :  { %v189_v30 = vsel %vm89_vm0, %v162_v24, 0.0 }
  0x7e   :  { %v190_v37 = vrot.slane %v189_v30, 4 }
  0x80   :  { %v191_v48 = vadd.f32 %v190_v37, %v189_v30 }
  0x82   :  { %v137_v25 = vpop.permute.xlu2 %136  ;;  %v192_v62 = vrot.slane %v191_v48, 2 }
  0x83   :  { %v163_v26 = vmul.f32 %v137_v25, %v97_v22 }
  0x84   :  { %v193_v13 = vadd.f32 %v192_v62, %v191_v48  ;;  %v326_v62 = vld [vmem:[#allocation10 + $0x58] sm:$0xff] }
  0x85   :  { %v196_v34 = vsel %vm89_vm0, %v163_v26, 0.0 }
  0x86   :  { %v197_v41 = vrot.slane %v196_v34, 4 }
  0x88   :  { %v253_v16 = vpop.xlane.xlu0 %252  ;;  %v198_v52 = vadd.f32 %v197_v41, %v196_v34 }
  0x89   :  { %v254_v18 = vadd.f32 %v253_v16, %v249_v14 }
  0x8a   :  { %v151_v42 = vpop.permute.xlu2 %150  ;;  %v199_v2 = vrot.slane %v198_v52, 2 }
  0x8b   :  { %256 = vst.msk [vmem:[#allocation3] sm:$0xff] %vm91_vm1, %v254_v18  ;;  %v165_v44 = vmul.f32 %v151_v42, %v99_v35 }
  0x8d   :  { %v210_v51 = vsel %vm89_vm0, %v165_v44, 0.0 }
  0x8e   :  { %v211_v54 = vrot.slane %v210_v51, 4 }
  0x90   :  { %v212_v0 = vadd.f32 %v211_v54, %v210_v51 }
  0x91   :  { %v116_v19 = vpop.permute.xlu1 %115 }
  0x92   :  { %v160_v20 = vmul.f32 %v116_v19, %v94_v17  ;;  %v260_v29 = vld [vmem:[#allocation3] sm:$0xff]  ;;  %v213_v11 = vrot.slane %v212_v0, 2  ;;  %v200_v17 = vadd.f32 %v199_v2, %v198_v52  ;;  %v322_v2 = vld [vmem:[#allocation10 + $0x38] sm:$0xff] }
  0x93   :  { %v261_v32 = vmax.f32 %v260_v29, 1e-06 }
  0x94   :  { %v175_v23 = vsel %vm89_vm0, %v160_v20, 0.0  ;;  %v214_v26 = vadd.f32 %v213_v11, %v212_v0  ;;  %v324_v0 = vld [vmem:[#allocation10 + $0x48] sm:$0xff] }
  0x95   :  { %v176_v28 = vrot.slane %v175_v23, 4  ;;  %392 = vrcp.f32 %v261_v32  ;;  %v271_v5 = vand.u32 2147483647, %v261_v32  ;;  %v273_v6 = vand.u32 2147483648, %v261_v32  ;;  %v316_v11 = vld [vmem:[#allocation10 + $0x8] sm:$0xff] }
  0x96   :  { %vm267_vm4 = vweird.f32 %v261_v32  ;;  %v215_v37 = vrot.slane %v214_v26, 1 }
  0x97   :  { %v177_v36 = vadd.f32 %v176_v28, %v175_v23  ;;  %vm272_vm6 = vcmp.eq.f32.partialorder %v271_v5, 8.507059e+37  ;;  %v274_v20 = vor.u32 1.1754944e-38, %v273_v6  ;;  %v194_v28 = vrot.slane %v193_v13, 1  ;;  %v319_v5 = vld [vmem:[#allocation10 + $0x20] sm:$0xff]  ;;  %v318_v6 = vld [vmem:[#allocation10 + $0x18] sm:$0xff] }
  0x99   :  { %v123_v31 = vpop.permute.xlu1 %122  ;;  %v178_v47 = vrot.slane %v177_v36, 2  ;;  %v195_v39 = vadd.f32 %v194_v28, %v193_v13  ;;  %v390_v13 = vld [vmem:[%s604_s3] ss:$0 sm:$0xff] }
  0x9a   :  { %v161_v33 = vmul.f32 %v123_v31, %v95_v27  ;;  %v201_v31 = vrot.slane %v200_v17, 1 }
  0x9b   :  { %v393_v55 = vpop.eup %392  ;;  %v109_v57 = vpop.permute.xlu0 %108  ;;  %v179_v61 = vadd.f32 %v178_v47, %v177_v36 }
  0x9c   :  { %v182_v40 = vsel %vm89_vm0, %v161_v33, 0.0  ;;  %v263_v58 = vmul.f32 %v393_v55, %v261_v32  ;;  %v159_v60 = vmul.f32 %v109_v57, %v93_v50  ;;  %vm268_vm3 = vweird.f32 %v393_v55  ;;  %v283_v57 = vld [vmem:[#allocation9] sm:$0xff] }
  0x9d   :  { %v183_v43 = vrot.slane %v182_v40, 4  ;;  %v180_v16 = vrot.slane %v179_v61, 1  ;;  %vm269_vm5 = vmor %vm267_vm4, %vm268_vm3  ;;  %v202_v41 = vadd.f32 %v201_v31, %v200_v17  ;;  %309 = vmatpush.msra.mxu0 %v283_v57  ;;  %v391_v17 = vld [vmem:[%s606_s5] ss:$0 sm:$0xff] }
  0x9e   :  { %v264_v1 = vsub.f32 1.0, %v263_v58  ;;  %v168_v4 = vsel %vm89_vm0, %v159_v60, 0.0  ;;  %v330_v58 = vld [vmem:[#allocation10 + $0x78] sm:$0xff]  ;;  %v328_v60 = vld [vmem:[#allocation10 + $0x68] sm:$0xff] }
  0x9f   :  { %v184_v49 = vadd.f32 %v183_v43, %v182_v40  ;;  %v169_v7 = vrot.slane %v168_v4, 4  ;;  %v181_v33 = vadd.f32 %v180_v16, %v179_v61  ;;  %335 = vmatpush.msra.mxu1 %v330_v58  ;;  %v327_v61 = vld [vmem:[#allocation10 + $0x60] sm:$0xff] }
  0xa0   :  { %v265_v8 = vmul.f32 %v393_v55, %v264_v1  ;;  %v323_v1 = vld [vmem:[#allocation10 + $0x40] sm:$0xff] }
  0xa1   :  { %v144_v53 = vpop.permute.xlu1 %143  ;;  %v185_v59 = vrot.slane %v184_v49, 2  ;;  %v170_v14 = vadd.f32 %v169_v7, %v168_v4  ;;  %v320_v4 = vld [vmem:[#allocation10 + $0x28] sm:$0xff] }
  0xa2   :  { %v164_v56 = vmul.f32 %v144_v53, %v98_v46  ;;  %v266_v15 = vadd.f32 %v393_v55, %v265_v8  ;;  %v216_v46 = vadd.f32 %v215_v37, %v214_v26  ;;  %v102_v53 = vld [vmem:[#allocation2] sm:$0xff] }
  0xa3   :  { %v186_v9 = vadd.f32 %v185_v59, %v184_v49  ;;  %v171_v21 = vrot.slane %v170_v14, 2  ;;  %v329_v59 = vld [vmem:[#allocation10 + $0x70] sm:$0xff] }
  0xa4   :  { %v203_v63 = vsel %vm89_vm0, %v164_v56, 0.0  ;;  %v270_v23 = vsel %vm269_vm5, %v393_v55, %v266_v15  ;;  %336 = vmatpush.msra.mxu1 %v329_v59 }
  0xa5   :  { %v204_v3 = vrot.slane %v203_v63, 4  ;;  %v187_v24 = vrot.slane %v186_v9, 1  ;;  %v275_v27 = vsel %vm272_vm6, %v274_v20, %v270_v23  ;;  %v172_v29 = vadd.f32 %v171_v21, %v170_v14 }
  0xa6   :  { %279 = vperm.xlu2 %388, %v275_v27   ;;  %337 = vmatpush.msra.mxu1 %v328_v60 }
  0xa7   :  { %v205_v10 = vadd.f32 %v204_v3, %v203_v63  ;;  %v173_v35 = vrot.slane %v172_v29, 1  ;;  %v188_v36 = vadd.f32 %v187_v24, %v186_v9  ;;  %v325_v63 = vld [vmem:[#allocation10 + $0x50] sm:$0xff] }
  0xa8   :  { %338 = vmatpush.msra.mxu1 %v327_v61  ;;  %v321_v3 = vld [vmem:[#allocation10 + $0x30] sm:$0xff] }
  0xa9   :  { %v206_v18 = vrot.slane %v205_v10, 2  ;;  %v158_v19 = vpop.permute.xlu1 %157  ;;  %v174_v40 = vadd.f32 %v173_v35, %v172_v29 }
  0xaa   :  { %v166_v22 = vmul.f32 %v158_v19, %v100_v12  ;;  %339 = vmatpush.msra.mxu1 %v326_v62  ;;  %v315_v12 = vld [vmem:[#allocation10] sm:$0xff] }
  0xab   :  { %v207_v25 = vadd.f32 %v206_v18, %v205_v10  ;;  %v233_v44 = vsel %vm232_vm7, %v181_v33, %v174_v40  ;;  %v317_v10 = vld [vmem:[#allocation10 + $0x10] sm:$0xff] }
  0xac   :  { %v217_v30 = vsel %vm89_vm0, %v166_v22, 0.0  ;;  %v235_v45 = vsel %vm234_vm8, %v188_v36, %v233_v44  ;;  %340 = vmatpush.msra.mxu1 %v325_v63 }
  0xad   :  { %v218_v32 = vrot.slane %v217_v30, 4  ;;  %v208_v34 = vrot.slane %v207_v25, 1  ;;  %v237_v48 = vsel %vm236_vm9, %v195_v39, %v235_v45 }
  0xae   :  { %v239_v49 = vsel %vm238_vm10, %v202_v41, %v237_v48  ;;  %341 = vmatpush.msra.mxu1 %v324_v0 }
  0xaf   :  { %v219_v38 = vadd.f32 %v218_v32, %v217_v30  ;;  %v209_v43 = vadd.f32 %v208_v34, %v207_v25 }
  0xb0   :  { %342 = vmatpush.msra.mxu1 %v323_v1 }
  0xb1   :  { %v220_v42 = vrot.slane %v219_v38, 2  ;;  %v241_v51 = vsel %vm240_vm11, %v209_v43, %v239_v49 }
  0xb2   :  { %v243_v52 = vsel %vm242_vm12, %v216_v46, %v241_v51  ;;  %343 = vmatpush.msra.mxu1 %v322_v2 }
  0xb3   :  { %v221_v47 = vadd.f32 %v220_v42, %v219_v38 }
  0xb4   :  { %344 = vmatpush.msra.mxu1 %v321_v3 }
  0xb5   :  { %v222_v50 = vrot.slane %v221_v47, 1 }
  0xb6   :  { %345 = vmatpush.msra.mxu1 %v320_v4 }
  0xb7   :  { %v223_v54 = vadd.f32 %v222_v50, %v221_v47 }
  0xb8   :  { %346 = vmatpush.msra.mxu1 %v319_v5 }
  0xb9   :  { %v245_v55 = vsel %vm244_vm13, %v223_v54, %v243_v52 }
  0xba   :  { %v247_v56 = vadd.f32 %v245_v55, %v102_v53  ;;  %347 = vmatpush.msra.mxu1 %v318_v6 }
  0xbc   :  { %248 = vst.msk [vmem:[#allocation2] sm:$0xff] %vm89_vm0, %v247_v56  ;;  %348 = vmatpush.msra.mxu1 %v317_v10 }
  0xbe   :  { %349 = vmatpush.msra.mxu1 %v316_v11 }
  0xc0   :  { %350 = vmatpush.msra.mxu1 %v315_v12 }
  0xc3   :  { %v276_v8 = vld [vmem:[#allocation2] sm:$0xff] }
 0x100   :  { %v280_v7 = vpop.permute.xlu2 %279 }
 0x101   :  { %v282_v9 = vmul.f32 %v280_v7, %v276_v8 }
 0x103   :  { %375 = vmatmul.msk.f32.vlgmr.msra.gmra.mxu0 %vm89_vm0, %v282_v9 }
 0x180   :  { %v311_v14 = vpop.f32.mrf.mxu0 }
 0x181   :  { %v312_v15 = vadd.f32 %v390_v13, %v311_v14 }
 0x183   :  { %v314_v16 = vmax.f32 %v312_v15, 0.0 }
 0x185   :  { %351 = vmatmul.f32.vlgmr.msra.gmra.mxu1 %v314_v16 }
 0x202   :  { %v352_v18 = vpop.f32.mrf.mxu1 }
 0x203   :  { %v353_v19 = vadd.f32 %v391_v17, %v352_v18 }
 0x205   :  { %355 = vst [vmem:[#allocation12] sm:$0xff] %v353_v19 }
 0x206   :  { %366 = dma.vmem_to_hbm [thread:$0]  %s362_s20, 128, %s364_s23, [#allocation6]  }
 0x207   :  { %520 = dma.done.wait [#allocation6], 128  }
 0x208   :  { %521 = vsyncadd [#allocation6], 4294967168 }
 0x209   :  { %371 = vsyncpa [#allocation5], 1 }
 0x20a   :  { %372 = vsyncpa [#allocation8], 1 }
 0x20b   :  { %373 = vsyncpa [#allocation11], 1 }
 0x20c   :  { %374 = vsyncpa [#allocation6], 1 }

</bundles_post_ra>
